<compile_context>
chip_gen: v7x
topology: tpu7x:2x2x1
jax: 0.10.0
libtpu: 0.0.40
codegen_flags: <defaults>
</compile_context>

<pallas_src>
import functools

import jax
import jax.numpy as jnp
from jax import lax
from jax.experimental import pallas as pl
from jax.experimental.pallas import tpu as pltpu

_LANE = 128
_SUBLANE = 8
_VMEM_LIMIT = 32 * 1024 * 1024       # safe on v5e/v6e/v7x (v7x: 64 MiB physical)
_ACC_BUDGET = 4 * 1024 * 1024        # (rt, 128) f32 accumulator scratch budget
_POOLMAT_BUDGET = 2 * 1024 * 1024    # (g*T, g) pooling-matrix budget (small-T path)
_SMALL_T_BYTES = 512                 # small-T fast-path threshold (bytes per time row)


def _round_up(x, m):
    return ((x + m - 1) // m) * m


# --------------------------------------------------------------------------
# General path: time-tiled reduction with a lane-wide f32 accumulator.
# --------------------------------------------------------------------------
def _tap_kernel(x_ref, o_ref, acc_ref, *, t_total, tt, n_t):
    """Grid (row_blocks, time_blocks); time is the innermost reduction axis.

    acc_ref: (rt, 128) f32 lane-wide accumulator (VMEM scratch).  Per-step work
    is element-wise adds only (VPU); the cross-lane reduce (XLU), the 1/T
    scale, and the lane-dense (1, rt) store happen once, at the last time step.
    """
    ti = pl.program_id(1)
    n_chunks = tt // _LANE
    rem = t_total % tt           # static: valid lane width of the last tile (0 => full)

    def chunk(k, masked):
        lo = k * _LANE
        if masked and lo >= rem:
            return None                                       # fully past T: skipped statically
        v = x_ref[:, lo:lo + _LANE].astype(jnp.float32)
        if masked and lo + _LANE > rem:                       # straddles T: mask padded lanes
            col = lax.broadcasted_iota(jnp.int32, v.shape, 1)
            v = jnp.where(col < (rem - lo), v, 0.0)
        return v

    def accumulate(init, masked):
        wrote = False
        k = 0
        while k < n_chunks:
            v = chunk(k, masked)
            k += 1
            if v is None:
                break
            # Pair chunks before touching the accumulator: halves the per-chunk
            # accumulator load/store traffic (v5e has a single vst slot).
            if k < n_chunks:
                v2 = chunk(k, masked)
                if v2 is not None:
                    v = v + v2
                    k += 1
            if init and not wrote:
                acc_ref[...] = v          # fold the zero-init into the first write
            else:
                acc_ref[...] += v
            wrote = True
        if init and not wrote:            # statically unreachable; defensive only
            acc_ref[...] = jnp.zeros_like(acc_ref)

    def finalize():
        row_sum = jnp.sum(acc_ref[...], axis=-1)                       # single XLU reduce
        o_ref[...] = ((row_sum * (1.0 / t_total))[None, :]).astype(o_ref.dtype)  # (1, rt)

    tail_masked = rem != 0
    if n_t == 1:
        accumulate(init=True, masked=tail_masked)
        finalize()
    else:
        @pl.when(ti == 0)
        def _first():
            accumulate(init=True, masked=False)

        if n_t > 2:
            @pl.when(jnp.logical_and(ti > 0, ti < n_t - 1))
            def _middle():
                accumulate(init=False, masked=False)

        @pl.when(ti == n_t - 1)
        def _last():
            accumulate(init=False, masked=tail_masked)
            finalize()


# --------------------------------------------------------------------------
# Small-T path: rows folded into lanes + MXU matmul against block-diag ones.
# --------------------------------------------------------------------------
def _tap_small_t_kernel(x_ref, p_ref, o_ref, *, t_total):
    sums = jnp.dot(x_ref[...], p_ref[...], preferred_element_type=jnp.float32)
    o_ref[...] = (sums * (1.0 / t_total)).astype(o_ref.dtype)


def _small_t_fold(rows, t, itemsize):
    """Fold factor g (rows packed into the lane dim) for the small-T path."""
    g_cap = int((_POOLMAT_BUDGET // max(1, t * itemsize)) ** 0.5)
    g_cap = min(256, g_cap, rows)
    for g in range(g_cap, 7, -1):
        if rows % g == 0:
            return g
    return None


# --------------------------------------------------------------------------
# Wrapper
# --------------------------------------------------------------------------
def tap_pallas(x, *, time_tile=2048, row_tile=None,
               target_block_bytes=8 * 1024 * 1024):
    """Temporal average pooling: mean over the last axis, flattened from dim 1.

    x: (B, ..., T) with ndim >= 3. Returns shape (B, prod(middle dims)).
    """
    if x.ndim < 3:
        raise ValueError(f"TAP expects (B, ..., T) with ndim >= 3, got {x.shape}")

    b = x.shape[0]
    t = x.shape[-1]
    rows = 1
    for d in x.shape[:-1]:
        rows *= d
    itemsize = jnp.dtype(x.dtype).itemsize
    x2 = x.reshape(rows, t)   # mean over T commutes with this reshape

    # ---- small-T fast path: fold rows into lanes, MXU pooling matmul -------
    if t * itemsize <= _SMALL_T_BYTES and row_tile is None:
        g = _small_t_fold(rows, t, itemsize)
        if g is not None:
            s = rows // g
            w = g * t
            # Block-diagonal ones pooling matrix (exact in bf16/f32); the 1/T
            # scale is applied in f32 inside the kernel.
            pool = (jnp.arange(w, dtype=jnp.int32)[:, None] // t
                    == jnp.arange(g, dtype=jnp.int32)[None, :]).astype(x.dtype)
            if s <= _SUBLANE:
                sr = s
            else:
                sr = max(_SUBLANE,
                         (target_block_bytes // (w * itemsize)) // _SUBLANE * _SUBLANE)
                # Keep >= 2 super-row blocks whenever possible (v7x dual-TC).
                sr = min(sr, _round_up(pl.cdiv(s, 2), _SUBLANE))
                if sr >= s:
                    sr = s
            out = pl.pallas_call(
                functools.partial(_tap_small_t_kernel, t_total=t),
                out_shape=jax.ShapeDtypeStruct((s, g), x.dtype),
                grid_spec=pltpu.PrefetchScalarGridSpec(
                    num_scalar_prefetch=0,
                    grid=(pl.cdiv(s, sr),),
                    in_specs=[pl.BlockSpec((sr, w), lambda i: (i, 0)),
                              pl.BlockSpec((w, g), lambda i: (0, 0))],
                    out_specs=pl.BlockSpec((sr, g), lambda i: (i, 0)),
                ),
                compiler_params=pltpu.CompilerParams(
                    dimension_semantics=("parallel",),
                    vmem_limit_bytes=_VMEM_LIMIT,
                ),
            )(x2.reshape(s, w), pool)
            return out.reshape(b, -1)

    # ---- general path ------------------------------------------------------
    tt = min(int(time_tile), _round_up(t, _LANE))
    tt = _round_up(tt, _LANE)
    n_t = pl.cdiv(t, tt)

    if rows <= _LANE:
        rt = rows                 # single small row block (can't split at 128-lane granularity)
    else:
        if row_tile is None:
            rt_in = max(1, target_block_bytes // (tt * itemsize))   # ~8 MiB input block
            rt_acc = max(1, _ACC_BUDGET // (_LANE * 4))             # accumulator scratch cap
            rt = min(rt_in, rt_acc)
        else:
            rt = max(1, int(row_tile))
        # At least 2 row blocks (keeps both v7x TensorCores fed; neutral on v5e/v6e).
        rt = min(rt, _round_up(pl.cdiv(rows, 2), _LANE))
        if rt >= rows:
            rt = rows
        else:
            rt = max(_LANE, (rt // _LANE) * _LANE)  # lane-dense out block needs rt % 128 == 0

    grid = (pl.cdiv(rows, rt), n_t)
    kernel = functools.partial(_tap_kernel, t_total=t, tt=tt, n_t=n_t)

    out = pl.pallas_call(
        kernel,
        out_shape=jax.ShapeDtypeStruct((1, rows), x.dtype),
        grid_spec=pltpu.PrefetchScalarGridSpec(
            num_scalar_prefetch=0,
            grid=grid,
            in_specs=[pl.BlockSpec((rt, tt), lambda ri, ti: (ri, ti))],
            out_specs=pl.BlockSpec((1, rt), lambda ri, ti: (0, ri)),
            scratch_shapes=[pltpu.VMEM((rt, _LANE), jnp.float32)],
        ),
        compiler_params=pltpu.CompilerParams(
            dimension_semantics=("parallel", "arbitrary"),
            vmem_limit_bytes=_VMEM_LIMIT,
        ),
    )(x2)

    return out.reshape(b, -1)


if __name__ == "__main__":
    root = jax.random.PRNGKey(0)
    k1, k2, k3, k4 = jax.random.split(root, 4)

    # 1) 4D (B, C, F, T) f32 with small T -> fold + MXU-matmul fast path.
    B, C, F, T = 2, 4, 16, 16
    x4 = jax.random.normal(k1, (B, C, F, T), dtype=jnp.float32)
    out4 = jax.block_until_ready(tap_pallas(x4))
    ref4 = jnp.mean(x4, axis=-1).reshape(B, -1)
    assert out4.shape == (B, C * F), out4.shape
    assert jnp.allclose(out4, ref4, atol=1e-5, rtol=1e-5)

    # 2) 3D (B, C, T) f32, T not a multiple of 128 -> general path, masked tail.
    x3 = jax.random.normal(k2, (2, 8, 300), dtype=jnp.float32)
    out3 = jax.block_until_ready(tap_pallas(x3))
    ref3 = jnp.mean(x3, axis=-1).reshape(2, -1)
    assert out3.shape == (2, 8), out3.shape
    assert jnp.allclose(out3, ref3, atol=1e-5, rtol=1e-5)

    # 3) bf16 small-T path: native-dtype DMA, f32 MXU accumulation.
    xb = jax.random.normal(k3, (2, 4, 16, 16), dtype=jnp.bfloat16)
    outb = jax.block_until_ready(tap_pallas(xb))
    refb = jnp.mean(xb.astype(jnp.float32), axis=-1).reshape(2, -1).astype(jnp.bfloat16)
    assert outb.shape == (2, 64), outb.shape
    assert jnp.allclose(outb.astype(jnp.float32), refb.astype(jnp.float32),
                        atol=2e-2, rtol=2e-2)

    # 4) General path with 2 row blocks (partial last one), 3 time blocks
    #    (first/middle/last branches), masked tail, and chunk pairing.
    xg = jax.random.normal(k4, (2, 65, 530), dtype=jnp.float32)
    outg = jax.block_until_ready(tap_pallas(xg, time_tile=256))
    refg = jnp.mean(xg, axis=-1).reshape(2, -1)
    assert outg.shape == (2, 65), outg.shape
    assert jnp.allclose(outg, refg, atol=1e-5, rtol=1e-5)

    print("KERNEL_OK")
</pallas_src>

<mosaic_0001>
module attributes {stable_mosaic.version = 11 : i64} {
  func.func @_tap_small_t_kernel(%arg0: i32, %arg1: memref<1x2048xf32, #tpu.memory_space<vmem>>, %arg2: memref<2048x128xf32, #tpu.memory_space<vmem>>, %arg3: memref<1x128xf32, #tpu.memory_space<vmem>>) attributes {dimension_semantics = [#tpu.dimension_semantics<parallel>], iteration_bounds = array<i64: 1>, scalar_prefetch = 0 : i64, scratch_operands = 0 : i64, tpu.core_type = #tpu.core_type<tc>, window_params = [{transform_indices = @transform_0, window_bounds = array<i64: 1, 2048>}, {pipeline_mode = #tpu.pipeline_mode<synchronous>, transform_indices = @transform_1, window_bounds = array<i64: 2048, 128>}, {transform_indices = @transform_2, window_bounds = array<i64: 1, 128>}]} {
    %c0 = arith.constant 0 : index
    %c0_0 = arith.constant 0 : index
    %0 = vector.load %arg1[%c0, %c0_0] : memref<1x2048xf32, #tpu.memory_space<vmem>>, vector<1x2048xf32>
    %c0_1 = arith.constant 0 : index
    %c0_2 = arith.constant 0 : index
    %1 = vector.load %arg2[%c0_1, %c0_2] : memref<2048x128xf32, #tpu.memory_space<vmem>>, vector<2048x128xf32>
    %cst = arith.constant dense<0.000000e+00> : vector<1x128xf32>
    %2 = tpu.matmul %0, %1, %cst {dimension_numbers = #tpu.dot_dimension_numbers<[1], [0], [0], [1], [0, 0, 1, 1], [], []>} : vector<1x2048xf32>, vector<2048x128xf32>, vector<1x128xf32> -> vector<1x128xf32>
    %cst_3 = arith.constant 6.250000e-02 : f32
    %3 = vector.broadcast %cst_3 : f32 to vector<1x128xf32>
    %4 = arith.mulf %2, %3 : vector<1x128xf32>
    %c0_4 = arith.constant 0 : index
    %c0_5 = arith.constant 0 : index
    %5 = vector.load %arg3[%c0_4, %c0_5] : memref<1x128xf32, #tpu.memory_space<vmem>>, vector<1x128xf32>
    tpu.vector_store %arg3[%c0_4, %c0_5], %4 {strides = array<i32>} : memref<1x128xf32, #tpu.memory_space<vmem>>, vector<1x128xf32>,
    return
  }
  func.func @transform_0(%arg0: i32) -> (i32, i32) {
    %c0_i32 = arith.constant 0 : i32
    %c0_i32_0 = arith.constant 0 : i32
    return %arg0, %c0_i32 : i32, i32
  }
  func.func @transform_1(%arg0: i32) -> (i32, i32) {
    %c0_i32 = arith.constant 0 : i32
    %c0_i32_0 = arith.constant 0 : i32
    %c0_i32_1 = arith.constant 0 : i32
    return %c0_i32, %c0_i32_0 : i32, i32
  }
  func.func @transform_2(%arg0: i32) -> (i32, i32) {
    %c0_i32 = arith.constant 0 : i32
    %c0_i32_0 = arith.constant 0 : i32
    return %arg0, %c0_i32 : i32, i32
  }
}

</mosaic_0001>

<bundles_post_ra>
// kernel: tpu_custom_call.1
= control target key start
LH: loop header
LB: loop body
LE: loop exit
PB: predicated region body
PF: predicated region fallthrough
CT: control target
= control target key end

     0   :  { %7 = vsyncpa [#allocation3], 0  ;;  %s1694_s0 = inlined_call_operand.hbm [shape: f32[1,2048], index: 0, kind: input, shape index: {}]   ;;  %s1695_s1 = inlined_call_operand.hbm [shape: f32[2048,128], index: 1, kind: input, shape index: {}]   ;;  %s1696_s2 = inlined_call_operand.hbm [shape: f32[1,128], index: 2, kind: output, shape index: {}]  }
   0x1   :  { %8 = vsyncpa [#allocation6], 0 }
   0x2   :  { %9 = vsyncpa [#allocation4], 0  ;;  %s1569_s9 = smov [#allocation2]   ;;  %s1570_s11 = smov [#allocation5]  }
   0x3   :  { %s16_s10 = sshll.u32 %s1569_s9, 4  ;;  %s25_s12 = sshll.u32 %s1570_s11, 4  ;;  %s17_s10 = int_to_ptr.vmem [resolvable:$true] %s16_s10  ;;  %s1589_s12 = int_to_ptr.vmem [resolvable:$true] %s25_s12 }
   0x4   :  { %s1497_s15 = scalar_lea.hbm %s1694_s0, 256 }
   0x5   :  { %p1498_p0 = scmp.ne.s32.totalorder %s1694_s0, %s1497_s15  ;;  %p1501_p1 = scmp.lt.u32.totalorder %s1497_s15, %s1694_s0 }
   0x7   :  { %p1503_p2 = pnand %p1501_p1, %p1498_p0 }
   0x9   :  { %1506 = shalt.err (!%p1503_p2)
}
   0xa   :  { %s1507_s20 = scalar_lea.vmem %s17_s10, 256  ;;  %p1512_p4 = scmp.lt.s32.totalorder %s17_s10, %s17_s10 }
   0xb   :  { %p1508_p3 = scmp.ne.s32.totalorder %s17_s10, %s1507_s20  ;;  %p1513_p5 = scmp.lt.s32.totalorder %s1507_s20, %s1507_s20 }
   0xd   :  { %p1514_p6 = por %p1513_p5, %p1512_p4 }
   0xf   :  { %p1515_p7 = pnand %p1514_p6, %p1508_p3 }
  0x11   :  { %1518 = shalt.err (!%p1515_p7)
}
  0x12   :  { %19 = dma.hbm_to_vmem [thread:$0]  %s1694_s0, 256, %s17_s10, [#allocation3]  }
  0x13   :  { %s1519_s25 = scalar_lea.hbm %s1695_s1, 32768 }
  0x14   :  { %p1520_p8 = scmp.ne.s32.totalorder %s1695_s1, %s1519_s25  ;;  %p1523_p9 = scmp.lt.u32.totalorder %s1519_s25, %s1695_s1 }
  0x16   :  { %p1525_p10 = pnand %p1523_p9, %p1520_p8 }
  0x18   :  { %1528 = shalt.err (!%p1525_p10)
}
  0x19   :  { %s1529_s30 = scalar_lea.vmem %s1589_s12, 32768  ;;  %p1534_p12 = scmp.lt.s32.totalorder %s1589_s12, %s1589_s12 }
  0x1a   :  { %p1530_p11 = scmp.ne.s32.totalorder %s1589_s12, %s1529_s30  ;;  %p1535_p13 = scmp.lt.s32.totalorder %s1529_s30, %s1529_s30 }
  0x1c   :  { %p1536_p0 = por %p1535_p13, %p1534_p12 }
  0x1e   :  { %p1537_p1 = pnand %p1536_p0, %p1530_p11 }
  0x20   :  { %1540 = shalt.err (!%p1537_p1)
}
  0x21   :  { %s1571_s0 = smov 128   ;;  %s1572_s3 = smov 8  }
  0x22   :  { %31 = dma.hbm_to_vmem [thread:$0]  %s1695_s1, 32768, %s1589_s12, [#allocation6], %s1571_s0, %s1571_s0, %s1572_s3  }
  0x23   :  { %1563 = dma.done.wait [#allocation3], 256  }
  0x24   :  { %1564 = vsyncadd [#allocation3], 4294967040 }
  0x25   :  { %1565 = dma.done.wait [#allocation6], 32768  }
  0x26   :  { %1566 = vsyncadd [#allocation6], 4294934528  ;;  %v56_v0 = vld [vmem:[#allocation5 + $0x80] sm:$0xff]  ;;  %v57_v1 = vld [vmem:[#allocation5 + $0x88] sm:$0xff]  ;;  %v298_v47 = vlaneseq  ;;  %s1573_s1 = smov [#allocation7]  }
  0x27   :  { %v88_v2 = vld [vmem:[#allocation5 + $0x180] sm:$0xff]  ;;  %v1236_v3 = vpack.c.bf16 %v57_v1, %v56_v0  ;;  %v89_v4 = vld [vmem:[#allocation5 + $0x188] sm:$0xff]  ;;  %v58_v11 = vld [vmem:[#allocation5 + $0x90] sm:$0xff]  ;;  %s946_s6 = sshll.u32 %s1573_s1, 4  ;;  %s947_s6 = int_to_ptr.vmem [resolvable:$true] %s946_s6 }
  0x28   :  { %v40_v5 = vld [vmem:[#allocation5] sm:$0xff]  ;;  %v41_v6 = vld [vmem:[#allocation5 + $0x8] sm:$0xff]  ;;  %v1268_v7 = vpack.c.bf16 %v89_v4, %v88_v2  ;;  %v59_v13 = vld [vmem:[#allocation5 + $0x98] sm:$0xff]  ;;  %v1620_v61 = vshrl.u32 %v298_v47, 7  ;;  %s1541_s7 = scalar_lea.vmem %s947_s6, 16  ;;  %s1545_s8 = scalar_lea.vmem %s947_s6, 32 }
  0x29   :  { %v1238_v8 = vpack.c.bf16 %v41_v6, %v40_v5  ;;  %v72_v9 = vld [vmem:[#allocation5 + $0x100] sm:$0xff]  ;;  %v73_v10 = vld [vmem:[#allocation5 + $0x108] sm:$0xff]  ;;  %1237 = vmatprep.subr.bf16.mxu0 %v1236_v3  ;;  %v90_v14 = vld [vmem:[#allocation5 + $0x190] sm:$0xff]  ;;  %v1240_v16 = vpack.c.bf16 %v59_v13, %v58_v11  ;;  %p1542_p2 = scmp.ne.s32.totalorder %s947_s6, %s1541_s7  ;;  %p1546_p3 = scmp.lt.s32.totalorder %s947_s6, %s947_s6 }
  0x2a   :  { %v1270_v12 = vpack.c.bf16 %v73_v10, %v72_v9  ;;  %v91_v15 = vld [vmem:[#allocation5 + $0x198] sm:$0xff]  ;;  %1269 = vmatprep.subr.bf16.mxu1 %v1268_v7  ;;  %v42_v18 = vld [vmem:[#allocation5 + $0x10] sm:$0xff]  ;;  %v60_v23 = vld [vmem:[#allocation5 + $0xa0] sm:$0xff]  ;;  %v304_v10 = vsub.s32 1, %v1620_v61  ;;  %v312_v11 = vsub.s32 3, %v1620_v61  ;;  %p1547_p4 = scmp.lt.s32.totalorder %s1545_s8, %s1541_s7 }
  0x2b   :  { %1239 = vmatpush3.bf16.msra.mxu0 %v1238_v8  ;;  %v1272_v17 = vpack.c.bf16 %v91_v15, %v90_v14  ;;  %v43_v19 = vld [vmem:[#allocation5 + $0x18] sm:$0xff]  ;;  %v74_v20 = vld [vmem:[#allocation5 + $0x110] sm:$0xff]  ;;  %v61_v24 = vld [vmem:[#allocation5 + $0xa8] sm:$0xff] }
  0x2c   :  { %1271 = vmatpush3.bf16.msra.mxu1 %v1270_v12  ;;  %v1242_v21 = vpack.c.bf16 %v43_v19, %v42_v18  ;;  %v75_v22 = vld [vmem:[#allocation5 + $0x118] sm:$0xff]  ;;  %1241 = vmatprep.subr.bf16.mxu0 %v1240_v16  ;;  %v1244_v26 = vpack.c.bf16 %v61_v24, %v60_v23  ;;  %v92_v27 = vld [vmem:[#allocation5 + $0x1a0] sm:$0xff]  ;;  %v93_v28 = vld [vmem:[#allocation5 + $0x1a8] sm:$0xff]  ;;  %p1548_p5 = por %p1547_p4, %p1546_p3 }
  0x2d   :  { %1273 = vmatprep.subr.bf16.mxu1 %v1272_v17  ;;  %v1274_v25 = vpack.c.bf16 %v75_v22, %v74_v20  ;;  %v44_v29 = vld [vmem:[#allocation5 + $0x20] sm:$0xff]  ;;  %v1276_v30 = vpack.c.bf16 %v93_v28, %v92_v27  ;;  %v45_v31 = vld [vmem:[#allocation5 + $0x28] sm:$0xff]  ;;  %v62_v35 = vld [vmem:[#allocation5 + $0xb0] sm:$0xff] }
  0x2e   :  { %v76_v32 = vld [vmem:[#allocation5 + $0x120] sm:$0xff]  ;;  %v77_v33 = vld [vmem:[#allocation5 + $0x128] sm:$0xff]  ;;  %v1246_v34 = vpack.c.bf16 %v45_v31, %v44_v29  ;;  %v63_v36 = vld [vmem:[#allocation5 + $0xb8] sm:$0xff]  ;;  %p1549_p6 = pnand %p1548_p5, %p1542_p2 }
  0x2f   :  { %1243 = vmatpush3.bf16.msra.mxu0 %v1242_v21  ;;  %v94_v37 = vld [vmem:[#allocation5 + $0x1b0] sm:$0xff]  ;;  %v1278_v38 = vpack.c.bf16 %v77_v33, %v76_v32  ;;  %v1248_v39 = vpack.c.bf16 %v63_v36, %v62_v35  ;;  %v95_v40 = vld [vmem:[#allocation5 + $0x1b8] sm:$0xff]  ;;  %v64_v46 = vld [vmem:[#allocation5 + $0xc0] sm:$0xff] }
  0x30   :  { %1275 = vmatpush3.bf16.msra.mxu1 %v1274_v25  ;;  %1245 = vmatprep.subr.bf16.mxu0 %v1244_v26  ;;  %v46_v41 = vld [vmem:[#allocation5 + $0x30] sm:$0xff]  ;;  %v47_v42 = vld [vmem:[#allocation5 + $0x38] sm:$0xff]  ;;  %v1280_v43 = vpack.c.bf16 %v95_v40, %v94_v37  ;;  %v65_v48 = vld [vmem:[#allocation5 + $0xc8] sm:$0xff] }
  0x31   :  { %1277 = vmatprep.subr.bf16.mxu1 %v1276_v30  ;;  %v78_v44 = vld [vmem:[#allocation5 + $0x130] sm:$0xff]  ;;  %v79_v45 = vld [vmem:[#allocation5 + $0x138] sm:$0xff]  ;;  %v96_v49 = vld [vmem:[#allocation5 + $0x1c0] sm:$0xff]  ;;  %v1250_v51 = vpack.c.bf16 %v47_v42, %v46_v41  ;;  %v1252_v53 = vpack.c.bf16 %v65_v48, %v64_v46 }
  0x32   :  { %v97_v50 = vld [vmem:[#allocation5 + $0x1c8] sm:$0xff]  ;;  %v1282_v52 = vpack.c.bf16 %v79_v45, %v78_v44  ;;  %v48_v54 = vld [vmem:[#allocation5 + $0x40] sm:$0xff]  ;;  %v66_v59 = vld [vmem:[#allocation5 + $0xd0] sm:$0xff] }
  0x33   :  { %1247 = vmatpush3.bf16.msra.mxu0 %v1246_v34  ;;  %v49_v55 = vld [vmem:[#allocation5 + $0x48] sm:$0xff]  ;;  %v80_v56 = vld [vmem:[#allocation5 + $0x140] sm:$0xff]  ;;  %v1284_v57 = vpack.c.bf16 %v97_v50, %v96_v49  ;;  %v67_v60 = vld [vmem:[#allocation5 + $0xd8] sm:$0xff] }
  0x34   :  { %1279 = vmatpush3.bf16.msra.mxu1 %v1278_v38  ;;  %1249 = vmatprep.subr.bf16.mxu0 %v1248_v39  ;;  %v81_v58 = vld [vmem:[#allocation5 + $0x148] sm:$0xff]  ;;  %v98_v62 = vld [vmem:[#allocation5 + $0x1d0] sm:$0xff]  ;;  %v99_v63 = vld [vmem:[#allocation5 + $0x1d8] sm:$0xff]  ;;  %v1254_v0 = vpack.c.bf16 %v49_v55, %v48_v54  ;;  %v1256_v2 = vpack.c.bf16 %v67_v60, %v66_v59  ;;  %v300_v39 = vsub.s32 0, %v1620_v61 }
  0x35   :  { %1281 = vmatprep.subr.bf16.mxu1 %v1280_v43  ;;  %v1286_v1 = vpack.c.bf16 %v81_v58, %v80_v56  ;;  %v50_v3 = vld [vmem:[#allocation5 + $0x50] sm:$0xff]  ;;  %v51_v4 = vld [vmem:[#allocation5 + $0x58] sm:$0xff]  ;;  %v1288_v6 = vpack.c.bf16 %v99_v63, %v98_v62  ;;  %v68_v8 = vld [vmem:[#allocation5 + $0xe0] sm:$0xff]  ;;  %v308_v43 = vsub.s32 2, %v1620_v61 }
  0x36   :  { %v82_v5 = vld [vmem:[#allocation5 + $0x150] sm:$0xff]  ;;  %v83_v7 = vld [vmem:[#allocation5 + $0x158] sm:$0xff]  ;;  %v69_v9 = vld [vmem:[#allocation5 + $0xe8] sm:$0xff]  ;;  %v1258_v14 = vpack.c.bf16 %v51_v4, %v50_v3 }
  0x37   :  { %1251 = vmatpush3.bf16.msra.mxu0 %v1250_v51  ;;  %v100_v12 = vld [vmem:[#allocation5 + $0x1e0] sm:$0xff]  ;;  %v101_v13 = vld [vmem:[#allocation5 + $0x1e8] sm:$0xff]  ;;  %v1290_v16 = vpack.c.bf16 %v83_v7, %v82_v5  ;;  %v1260_v17 = vpack.c.bf16 %v69_v9, %v68_v8  ;;  %v1624_v20 = vld [vmem:[#allocation2] sm:$0xff] }
  0x38   :  { %1283 = vmatpush3.bf16.msra.mxu1 %v1282_v52  ;;  %1253 = vmatprep.subr.bf16.mxu0 %v1252_v53  ;;  %v52_v15 = vld [vmem:[#allocation5 + $0x60] sm:$0xff]  ;;  %v53_v18 = vld [vmem:[#allocation5 + $0x68] sm:$0xff]  ;;  %v1292_v21 = vpack.c.bf16 %v101_v13, %v100_v12  ;;  %v70_v23 = vld [vmem:[#allocation5 + $0xf0] sm:$0xff]  ;;  %v305_v25 = vrot.slane %v1624_v20, %v304_v10  ;;  %v313_v26 = vrot.slane %v1624_v20, %v312_v11  ;;  %v320_v53 = vsub.s32 5, %v1620_v61 }
  0x39   :  { %1285 = vmatprep.subr.bf16.mxu1 %v1284_v57  ;;  %v84_v19 = vld [vmem:[#allocation5 + $0x160] sm:$0xff]  ;;  %v85_v22 = vld [vmem:[#allocation5 + $0x168] sm:$0xff]  ;;  %v71_v24 = vld [vmem:[#allocation5 + $0xf8] sm:$0xff]  ;;  %v1262_v29 = vpack.c.bf16 %v53_v18, %v52_v15  ;;  %v301_v54 = vrot.slane %v1624_v20, %v300_v39  ;;  %v328_v57 = vsub.s32 7, %v1620_v61  ;;  %v309_v58 = vrot.slane %v1624_v20, %v308_v43 }
  0x3a   :  { %v102_v27 = vld [vmem:[#allocation5 + $0x1f0] sm:$0xff]  ;;  %v103_v28 = vld [vmem:[#allocation5 + $0x1f8] sm:$0xff]  ;;  %442 = vmatprep.mubr.f32.mxu0 %v305_v25  ;;  %v1294_v30 = vpack.c.bf16 %v85_v22, %v84_v19  ;;  %v1264_v31 = vpack.c.bf16 %v71_v24, %v70_v23  ;;  %512 = vmatprep.mubr.f32.mxu1 %v313_v26  ;;  %v120_v37 = vld [vmem:[#allocation5 + $0x280] sm:$0xff] }
  0x3b   :  { %1255 = vmatpush3.bf16.msra.mxu0 %v1254_v0  ;;  %v54_v32 = vld [vmem:[#allocation5 + $0x70] sm:$0xff]  ;;  %v55_v33 = vld [vmem:[#allocation5 + $0x78] sm:$0xff]  ;;  %v1296_v35 = vpack.c.bf16 %v103_v28, %v102_v27  ;;  %v121_v38 = vld [vmem:[#allocation5 + $0x288] sm:$0xff]  ;;  %v329_v9 = vrot.slane %v1624_v20, %v328_v57 }
  0x3c   :  { %1287 = vmatpush3.bf16.msra.mxu1 %v1286_v1  ;;  %1257 = vmatprep.subr.bf16.mxu0 %v1256_v2  ;;  %v86_v34 = vld [vmem:[#allocation5 + $0x170] sm:$0xff]  ;;  %v87_v36 = vld [vmem:[#allocation5 + $0x178] sm:$0xff]  ;;  %v152_v40 = vld [vmem:[#allocation5 + $0x380] sm:$0xff]  ;;  %v1266_v42 = vpack.c.bf16 %v55_v33, %v54_v32  ;;  %v1300_v45 = vpack.c.bf16 %v121_v38, %v120_v37 }
  0x3d   :  { %1289 = vmatprep.subr.bf16.mxu1 %v1288_v6  ;;  %v153_v41 = vld [vmem:[#allocation5 + $0x388] sm:$0xff]  ;;  %v1298_v44 = vpack.c.bf16 %v87_v36, %v86_v34  ;;  %v104_v46 = vld [vmem:[#allocation5 + $0x200] sm:$0xff]  ;;  %v122_v51 = vld [vmem:[#allocation5 + $0x290] sm:$0xff]  ;;  %v321_v6 = vrot.slane %v1624_v20, %v320_v53 }
  0x3e   :  { %v105_v47 = vld [vmem:[#allocation5 + $0x208] sm:$0xff]  ;;  %v136_v48 = vld [vmem:[#allocation5 + $0x300] sm:$0xff]  ;;  %v1332_v49 = vpack.c.bf16 %v153_v41, %v152_v40  ;;  %v123_v52 = vld [vmem:[#allocation5 + $0x298] sm:$0xff] }
  0x3f   :  { %1259 = vmatpush3.bf16.msra.mxu0 %v1258_v14  ;;  %v137_v50 = vld [vmem:[#allocation5 + $0x308] sm:$0xff]  ;;  %v154_v55 = vld [vmem:[#allocation5 + $0x390] sm:$0xff]  ;;  %v155_v56 = vld [vmem:[#allocation5 + $0x398] sm:$0xff]  ;;  %v1302_v59 = vpack.c.bf16 %v105_v47, %v104_v46  ;;  %v1304_v62 = vpack.c.bf16 %v123_v52, %v122_v51 }
  0x40   :  { %1291 = vmatpush3.bf16.msra.mxu1 %v1290_v16  ;;  %1261 = vmatprep.subr.bf16.mxu0 %v1260_v17  ;;  %v1334_v60 = vpack.c.bf16 %v137_v50, %v136_v48  ;;  %v106_v63 = vld [vmem:[#allocation5 + $0x210] sm:$0xff]  ;;  %v107_v0 = vld [vmem:[#allocation5 + $0x218] sm:$0xff]  ;;  %v1336_v2 = vpack.c.bf16 %v155_v56, %v154_v55  ;;  %v124_v4 = vld [vmem:[#allocation5 + $0x2a0] sm:$0xff] }
  0x41   :  { %1293 = vmatprep.subr.bf16.mxu1 %v1292_v21  ;;  %v138_v1 = vld [vmem:[#allocation5 + $0x310] sm:$0xff]  ;;  %v139_v3 = vld [vmem:[#allocation5 + $0x318] sm:$0xff]  ;;  %v125_v5 = vld [vmem:[#allocation5 + $0x2a8] sm:$0xff]  ;;  %v1306_v12 = vpack.c.bf16 %v107_v0, %v106_v63 }
  0x42   :  { %v156_v7 = vld [vmem:[#allocation5 + $0x3a0] sm:$0xff]  ;;  %v157_v8 = vld [vmem:[#allocation5 + $0x3a8] sm:$0xff]  ;;  %v1338_v13 = vpack.c.bf16 %v139_v3, %v138_v1  ;;  %v1308_v14 = vpack.c.bf16 %v125_v5, %v124_v4  ;;  %v126_v21 = vld [vmem:[#allocation5 + $0x2b0] sm:$0xff] }
  0x43   :  { %1263 = vmatpush3.bf16.msra.mxu0 %v1262_v29  ;;  %v108_v15 = vld [vmem:[#allocation5 + $0x220] sm:$0xff]  ;;  %v109_v16 = vld [vmem:[#allocation5 + $0x228] sm:$0xff]  ;;  %v1340_v18 = vpack.c.bf16 %v157_v8, %v156_v7  ;;  %v127_v22 = vld [vmem:[#allocation5 + $0x2b8] sm:$0xff] }
  0x44   :  { %1295 = vmatpush3.bf16.msra.mxu1 %v1294_v30  ;;  %1265 = vmatprep.subr.bf16.mxu0 %v1264_v31  ;;  %v140_v17 = vld [vmem:[#allocation5 + $0x320] sm:$0xff]  ;;  %v141_v19 = vld [vmem:[#allocation5 + $0x328] sm:$0xff]  ;;  %v158_v23 = vld [vmem:[#allocation5 + $0x3b0] sm:$0xff]  ;;  %v1310_v25 = vpack.c.bf16 %v109_v16, %v108_v15  ;;  %v1312_v27 = vpack.c.bf16 %v127_v22, %v126_v21 }
  0x45   :  { %1297 = vmatprep.subr.bf16.mxu1 %v1296_v35  ;;  %v159_v24 = vld [vmem:[#allocation5 + $0x3b8] sm:$0xff]  ;;  %v1342_v26 = vpack.c.bf16 %v141_v19, %v140_v17  ;;  %v110_v28 = vld [vmem:[#allocation5 + $0x230] sm:$0xff]  ;;  %v128_v33 = vld [vmem:[#allocation5 + $0x2c0] sm:$0xff] }
  0x46   :  { %v111_v29 = vld [vmem:[#allocation5 + $0x238] sm:$0xff]  ;;  %v142_v30 = vld [vmem:[#allocation5 + $0x330] sm:$0xff]  ;;  %v1344_v31 = vpack.c.bf16 %v159_v24, %v158_v23  ;;  %v129_v34 = vld [vmem:[#allocation5 + $0x2c8] sm:$0xff] }
  0x47   :  { %1267 = vmatpush3.bf16.msra.mxu0 %v1266_v42  ;;  %v143_v32 = vld [vmem:[#allocation5 + $0x338] sm:$0xff]  ;;  %v160_v35 = vld [vmem:[#allocation5 + $0x3c0] sm:$0xff]  ;;  %v161_v36 = vld [vmem:[#allocation5 + $0x3c8] sm:$0xff]  ;;  %v1314_v37 = vpack.c.bf16 %v111_v29, %v110_v28  ;;  %v1316_v40 = vpack.c.bf16 %v129_v34, %v128_v33 }
  0x48   :  { %1299 = vmatpush3.bf16.msra.mxu1 %v1298_v44  ;;  %1301 = vmatprep.subr.bf16.mxu0 %v1300_v45  ;;  %v1346_v38 = vpack.c.bf16 %v143_v32, %v142_v30  ;;  %v112_v41 = vld [vmem:[#allocation5 + $0x240] sm:$0xff]  ;;  %v113_v42 = vld [vmem:[#allocation5 + $0x248] sm:$0xff]  ;;  %v1348_v45 = vpack.c.bf16 %v161_v36, %v160_v35  ;;  %v130_v47 = vld [vmem:[#allocation5 + $0x2d0] sm:$0xff] }
  0x49   :  { %1333 = vmatprep.subr.bf16.mxu1 %v1332_v49  ;;  %v144_v44 = vld [vmem:[#allocation5 + $0x340] sm:$0xff]  ;;  %v145_v46 = vld [vmem:[#allocation5 + $0x348] sm:$0xff]  ;;  %v131_v48 = vld [vmem:[#allocation5 + $0x2d8] sm:$0xff]  ;;  %v1318_v51 = vpack.c.bf16 %v113_v42, %v112_v41 }
  0x4a   :  { %443 = vmatmul.mubr.f32.vlgmr.msra.gmra.mrb[0].mxu0 %v301_v54  ;;  %v162_v49 = vld [vmem:[#allocation5 + $0x3d0] sm:$0xff]  ;;  %v163_v50 = vld [vmem:[#allocation5 + $0x3d8] sm:$0xff]  ;;  %v1350_v52 = vpack.c.bf16 %v145_v46, %v144_v44  ;;  %v1320_v54 = vpack.c.bf16 %v131_v48, %v130_v47  ;;  %v133_v63 = vld [vmem:[#allocation5 + $0x2e8] sm:$0xff] }
  0x4b   :  { %513 = vmatmul.mubr.f32.vlgmr.msra.gmra.mrb[0].mxu1 %v309_v58  ;;  %1303 = vmatpush3.bf16.msra.mxu0 %v1302_v59  ;;  %v114_v55 = vld [vmem:[#allocation5 + $0x250] sm:$0xff]  ;;  %v115_v56 = vld [vmem:[#allocation5 + $0x258] sm:$0xff]  ;;  %v1352_v59 = vpack.c.bf16 %v163_v50, %v162_v49  ;;  %v164_v0 = vld [vmem:[#allocation5 + $0x3e0] sm:$0xff] }
  0x4c   :  { %1335 = vmatpush3.bf16.msra.mxu1 %v1334_v60  ;;  %1305 = vmatprep.subr.bf16.mxu0 %v1304_v62  ;;  %v146_v58 = vld [vmem:[#allocation5 + $0x350] sm:$0xff]  ;;  %v147_v60 = vld [vmem:[#allocation5 + $0x358] sm:$0xff]  ;;  %v132_v62 = vld [vmem:[#allocation5 + $0x2e0] sm:$0xff] }
  0x4d   :  { %1337 = vmatprep.subr.bf16.mxu1 %v1336_v2  ;;  %582 = vmatprep.mubr.f32.mxu0 %v321_v6  ;;  %v165_v1 = vld [vmem:[#allocation5 + $0x3e8] sm:$0xff]  ;;  %v1322_v2 = vpack.c.bf16 %v115_v56, %v114_v55  ;;  %v1354_v3 = vpack.c.bf16 %v147_v60, %v146_v58  ;;  %v1324_v4 = vpack.c.bf16 %v133_v63, %v132_v62  ;;  %v116_v5 = vld [vmem:[#allocation5 + $0x260] sm:$0xff]  ;;  %v167_v15 = vld [vmem:[#allocation5 + $0x3f8] sm:$0xff] }
  0x4e   :  { %652 = vmatprep.mubr.f32.mxu1 %v329_v9  ;;  %v117_v6 = vld [vmem:[#allocation5 + $0x268] sm:$0xff]  ;;  %v148_v7 = vld [vmem:[#allocation5 + $0x360] sm:$0xff]  ;;  %v1356_v8 = vpack.c.bf16 %v165_v1, %v164_v0  ;;  %v118_v19 = vld [vmem:[#allocation5 + $0x270] sm:$0xff] }
  0x4f   :  { %1307 = vmatpush3.bf16.msra.mxu0 %v1306_v12  ;;  %v149_v9 = vld [vmem:[#allocation5 + $0x368] sm:$0xff]  ;;  %v134_v12 = vld [vmem:[#allocation5 + $0x2f0] sm:$0xff]  ;;  %v1326_v16 = vpack.c.bf16 %v117_v6, %v116_v5  ;;  %v119_v21 = vld [vmem:[#allocation5 + $0x278] sm:$0xff] }
  0x50   :  { %1339 = vmatpush3.bf16.msra.mxu1 %v1338_v13  ;;  %1309 = vmatprep.subr.bf16.mxu0 %v1308_v14  ;;  %v135_v13 = vld [vmem:[#allocation5 + $0x2f8] sm:$0xff]  ;;  %v166_v14 = vld [vmem:[#allocation5 + $0x3f0] sm:$0xff]  ;;  %v1358_v17 = vpack.c.bf16 %v149_v9, %v148_v7  ;;  %v216_v28 = vld [vmem:[#allocation5 + $0x580] sm:$0xff]  ;;  %v1330_v30 = vpack.c.bf16 %v119_v21, %v118_v19 }
  0x51   :  { %1341 = vmatprep.subr.bf16.mxu1 %v1340_v18  ;;  %v1328_v18 = vpack.c.bf16 %v135_v13, %v134_v12  ;;  %v150_v22 = vld [vmem:[#allocation5 + $0x370] sm:$0xff]  ;;  %v1360_v23 = vpack.c.bf16 %v167_v15, %v166_v14  ;;  %v151_v24 = vld [vmem:[#allocation5 + $0x378] sm:$0xff]  ;;  %v217_v29 = vld [vmem:[#allocation5 + $0x588] sm:$0xff] }
  0x52   :  { %v1362_v32 = vpack.c.bf16 %v151_v24, %v150_v22  ;;  %v168_v34 = vld [vmem:[#allocation5 + $0x400] sm:$0xff]  ;;  %v169_v35 = vld [vmem:[#allocation5 + $0x408] sm:$0xff]  ;;  %v187_v41 = vld [vmem:[#allocation5 + $0x498] sm:$0xff] }
  0x53   :  { %1311 = vmatpush3.bf16.msra.mxu0 %v1310_v25  ;;  %v184_v25 = vld [vmem:[#allocation5 + $0x480] sm:$0xff]  ;;  %v218_v44 = vld [vmem:[#allocation5 + $0x590] sm:$0xff]  ;;  %v1366_v46 = vpack.c.bf16 %v169_v35, %v168_v34  ;;  %v1656_v48 = vld [vmem:[#allocation2 + $0x8] sm:$0xff] }
  0x54   :  { %1343 = vmatpush3.bf16.msra.mxu1 %v1342_v26  ;;  %1313 = vmatprep.subr.bf16.mxu0 %v1312_v27  ;;  %v185_v26 = vld [vmem:[#allocation5 + $0x488] sm:$0xff]  ;;  %v316_v27 = vsub.s32 4, %v1620_v61  ;;  %v200_v36 = vld [vmem:[#allocation5 + $0x500] sm:$0xff]  ;;  %v203_v56 = vld [vmem:[#allocation5 + $0x518] sm:$0xff]  ;;  %v337_v60 = vrot.slane %v1656_v48, %v304_v10  ;;  %v345_v63 = vrot.slane %v1656_v48, %v312_v11 }
  0x55   :  { %1345 = vmatprep.subr.bf16.mxu1 %v1344_v31  ;;  %v324_v31 = vsub.s32 6, %v1620_v61  ;;  %v1364_v33 = vpack.c.bf16 %v185_v26, %v184_v25  ;;  %v188_v58 = vld [vmem:[#allocation5 + $0x4a0] sm:$0xff]  ;;  %v221_v62 = vld [vmem:[#allocation5 + $0x5a8] sm:$0xff]  ;;  %v190_v7 = vld [vmem:[#allocation5 + $0x4b0] sm:$0xff] }
  0x56   :  { %v317_v42 = vrot.slane %v1624_v20, %v316_v27  ;;  %v204_v5 = vld [vmem:[#allocation5 + $0x520] sm:$0xff]  ;;  %v205_v10 = vld [vmem:[#allocation5 + $0x528] sm:$0xff]  ;;  %v222_v9 = vld [vmem:[#allocation5 + $0x5b0] sm:$0xff] }
  0x57   :  { %1315 = vmatpush3.bf16.msra.mxu0 %v1314_v37  ;;  %v1396_v37 = vpack.c.bf16 %v217_v29, %v216_v28  ;;  %v325_v47 = vrot.slane %v1624_v20, %v324_v31  ;;  %v220_v20 = vld [vmem:[#allocation5 + $0x5a0] sm:$0xff]  ;;  %v223_v12 = vld [vmem:[#allocation5 + $0x5b8] sm:$0xff]  ;;  %v1406_v13 = vpack.c.bf16 %v205_v10, %v204_v5  ;;  %v174_v15 = vld [vmem:[#allocation5 + $0x430] sm:$0xff] }
  0x58   :  { %1347 = vmatpush3.bf16.msra.mxu1 %v1346_v38  ;;  %1317 = vmatprep.subr.bf16.mxu0 %v1316_v40  ;;  %v201_v38 = vld [vmem:[#allocation5 + $0x508] sm:$0xff]  ;;  %v186_v40 = vld [vmem:[#allocation5 + $0x490] sm:$0xff]  ;;  %v1404_v6 = vpack.c.bf16 %v221_v62, %v220_v20  ;;  %v207_v19 = vld [vmem:[#allocation5 + $0x538] sm:$0xff] }
  0x59   :  { %1349 = vmatprep.subr.bf16.mxu1 %v1348_v45  ;;  %v219_v45 = vld [vmem:[#allocation5 + $0x598] sm:$0xff]  ;;  %v1398_v49 = vpack.c.bf16 %v201_v38, %v200_v36  ;;  %v1368_v50 = vpack.c.bf16 %v187_v41, %v186_v40  ;;  %v192_v21 = vld [vmem:[#allocation5 + $0x4c0] sm:$0xff]  ;;  %v193_v22 = vld [vmem:[#allocation5 + $0x4c8] sm:$0xff] }
  0x5a   :  { %v1400_v55 = vpack.c.bf16 %v219_v45, %v218_v44  ;;  %v225_v24 = vld [vmem:[#allocation5 + $0x5c8] sm:$0xff]  ;;  %v1380_v28 = vpack.c.bf16 %v193_v22, %v192_v21  ;;  %v176_v29 = vld [vmem:[#allocation5 + $0x440] sm:$0xff]  ;;  %v194_v35 = vld [vmem:[#allocation5 + $0x4d0] sm:$0xff] }
  0x5b   :  { %1319 = vmatpush3.bf16.msra.mxu0 %v1318_v51  ;;  %v170_v51 = vld [vmem:[#allocation5 + $0x410] sm:$0xff]  ;;  %v209_v34 = vld [vmem:[#allocation5 + $0x548] sm:$0xff]  ;;  %v195_v36 = vld [vmem:[#allocation5 + $0x4d8] sm:$0xff] }
  0x5c   :  { %1351 = vmatpush3.bf16.msra.mxu1 %v1350_v52  ;;  %1321 = vmatprep.subr.bf16.mxu0 %v1320_v54  ;;  %v171_v52 = vld [vmem:[#allocation5 + $0x418] sm:$0xff]  ;;  %v202_v54 = vld [vmem:[#allocation5 + $0x510] sm:$0xff]  ;;  %v212_v20 = vld [vmem:[#allocation5 + $0x560] sm:$0xff] }
  0x5d   :  { %1353 = vmatprep.subr.bf16.mxu1 %v1352_v59  ;;  %v189_v59 = vld [vmem:[#allocation5 + $0x4a8] sm:$0xff]  ;;  %v1370_v0 = vpack.c.bf16 %v171_v52, %v170_v51  ;;  %v1402_v1 = vpack.c.bf16 %v203_v56, %v202_v54  ;;  %v227_v38 = vld [vmem:[#allocation5 + $0x5d8] sm:$0xff]  ;;  %v178_v44 = vld [vmem:[#allocation5 + $0x450] sm:$0xff] }
  0x5e   :  { %v179_v45 = vld [vmem:[#allocation5 + $0x458] sm:$0xff]  ;;  %v197_v51 = vld [vmem:[#allocation5 + $0x4e8] sm:$0xff]  ;;  %v228_v52 = vld [vmem:[#allocation5 + $0x5e0] sm:$0xff] }
  0x5f   :  { %1323 = vmatpush3.bf16.msra.mxu0 %v1322_v2  ;;  %v1372_v2 = vpack.c.bf16 %v189_v59, %v188_v58  ;;  %v229_v54 = vld [vmem:[#allocation5 + $0x5e8] sm:$0xff]  ;;  %v180_v59 = vld [vmem:[#allocation5 + $0x460] sm:$0xff]  ;;  %v182_v10 = vld [vmem:[#allocation5 + $0x470] sm:$0xff] }
  0x60   :  { %1355 = vmatpush3.bf16.msra.mxu1 %v1354_v3  ;;  %1325 = vmatprep.subr.bf16.mxu0 %v1324_v4  ;;  %v172_v3 = vld [vmem:[#allocation5 + $0x420] sm:$0xff]  ;;  %v173_v4 = vld [vmem:[#allocation5 + $0x428] sm:$0xff]  ;;  %v1420_v62 = vpack.c.bf16 %v229_v54, %v228_v52 }
  0x61   :  { %1357 = vmatprep.subr.bf16.mxu1 %v1356_v8  ;;  %v191_v8 = vld [vmem:[#allocation5 + $0x4b8] sm:$0xff]  ;;  %v1374_v11 = vpack.c.bf16 %v173_v4, %v172_v3  ;;  %v233_v21 = vld [vmem:[#allocation5 + $0x608] sm:$0xff]  ;;  %v264_v22 = vld [vmem:[#allocation5 + $0x700] sm:$0xff] }
  0x62   :  { %v1376_v14 = vpack.c.bf16 %v191_v8, %v190_v7  ;;  %v231_v3 = vld [vmem:[#allocation5 + $0x5f8] sm:$0xff]  ;;  %v214_v8 = vld [vmem:[#allocation5 + $0x570] sm:$0xff]  ;;  %v237_v52 = vld [vmem:[#allocation5 + $0x628] sm:$0xff] }
  0x63   :  { %1327 = vmatpush3.bf16.msra.mxu0 %v1326_v16  ;;  %v175_v16 = vld [vmem:[#allocation5 + $0x438] sm:$0xff]  ;;  %v268_v54 = vld [vmem:[#allocation5 + $0x720] sm:$0xff] }
  0x64   :  { %1359 = vmatpush3.bf16.msra.mxu1 %v1358_v17  ;;  %1329 = vmatprep.subr.bf16.mxu0 %v1328_v18  ;;  %v206_v17 = vld [vmem:[#allocation5 + $0x530] sm:$0xff]  ;;  %v1408_v18 = vpack.c.bf16 %v223_v12, %v222_v9  ;;  %v1378_v25 = vpack.c.bf16 %v175_v16, %v174_v15  ;;  %v183_v7 = vld [vmem:[#allocation5 + $0x478] sm:$0xff]  ;;  %v281_v15 = vld [vmem:[#allocation5 + $0x788] sm:$0xff] }
  0x65   :  { %1361 = vmatprep.subr.bf16.mxu1 %v1360_v23  ;;  %v224_v23 = vld [vmem:[#allocation5 + $0x5c0] sm:$0xff]  ;;  %v1410_v26 = vpack.c.bf16 %v207_v19, %v206_v17  ;;  %v215_v12 = vld [vmem:[#allocation5 + $0x578] sm:$0xff]  ;;  %v1394_v16 = vpack.c.bf16 %v183_v7, %v182_v10  ;;  %v289_v10 = vld [vmem:[#allocation5 + $0x7c8] sm:$0xff] }
  0x66   :  { %v1426_v17 = vpack.c.bf16 %v215_v12, %v214_v8  ;;  %v232_v19 = vld [vmem:[#allocation5 + $0x600] sm:$0xff] }
  0x67   :  { %1331 = vmatpush3.bf16.msra.mxu0 %v1330_v30  ;;  %v177_v30 = vld [vmem:[#allocation5 + $0x448] sm:$0xff]  ;;  %v240_v12 = vld [vmem:[#allocation5 + $0x640] sm:$0xff] }
  0x68   :  { %1363 = vmatpush3.bf16.msra.mxu1 %v1362_v32  ;;  %1365 = vmatprep.subr.bf16.mxu0 %v1364_v33  ;;  %v208_v32 = vld [vmem:[#allocation5 + $0x540] sm:$0xff]  ;;  %v1412_v33 = vpack.c.bf16 %v225_v24, %v224_v23  ;;  %v1382_v40 = vpack.c.bf16 %v177_v30, %v176_v29  ;;  %v265_v24 = vld [vmem:[#allocation5 + $0x708] sm:$0xff]  ;;  %v282_v29 = vld [vmem:[#allocation5 + $0x790] sm:$0xff] }
  0x69   :  { %1397 = vmatprep.subr.bf16.mxu1 %v1396_v37  ;;  %v226_v37 = vld [vmem:[#allocation5 + $0x5d0] sm:$0xff]  ;;  %v1414_v41 = vpack.c.bf16 %v209_v34, %v208_v32  ;;  %v283_v30 = vld [vmem:[#allocation5 + $0x798] sm:$0xff]  ;;  %v1430_v32 = vpack.c.bf16 %v233_v21, %v232_v19  ;;  %v1462_v34 = vpack.c.bf16 %v265_v24, %v264_v22 }
  0x6a   :  { %583 = vmatmul.mubr.f32.vlgmr.msra.gmra.mrb[2].mxu0 %v317_v42  ;;  %v1384_v42 = vpack.c.bf16 %v195_v36, %v194_v35  ;;  %v234_v36 = vld [vmem:[#allocation5 + $0x610] sm:$0xff]  ;;  %v291_v19 = vld [vmem:[#allocation5 + $0x7d8] sm:$0xff] }
  0x6b   :  { %1367 = vmatpush3.bf16.msra.mxu0 %v1366_v46  ;;  %653 = vmatmul.mubr.f32.vlgmr.msra.gmra.mrb[2].mxu1 %v325_v47  ;;  %v210_v46 = vld [vmem:[#allocation5 + $0x550] sm:$0xff]  ;;  %v1416_v47 = vpack.c.bf16 %v227_v38, %v226_v37  ;;  %v235_v37 = vld [vmem:[#allocation5 + $0x618] sm:$0xff] }
  0x6c   :  { %1399 = vmatpush3.bf16.msra.mxu1 %v1398_v49  ;;  %1369 = vmatprep.subr.bf16.mxu0 %v1368_v50  ;;  %v211_v49 = vld [vmem:[#allocation5 + $0x558] sm:$0xff]  ;;  %v196_v50 = vld [vmem:[#allocation5 + $0x4e0] sm:$0xff]  ;;  %v266_v38 = vld [vmem:[#allocation5 + $0x710] sm:$0xff] }
  0x6d   :  { %1401 = vmatprep.subr.bf16.mxu1 %v1400_v55  ;;  %722 = vmatprep.mubr.f32.mxu0 %v337_v60  ;;  %v1386_v55 = vpack.c.bf16 %v179_v45, %v178_v44  ;;  %v1418_v56 = vpack.c.bf16 %v211_v49, %v210_v46  ;;  %v1388_v58 = vpack.c.bf16 %v197_v51, %v196_v50  ;;  %v181_v60 = vld [vmem:[#allocation5 + $0x468] sm:$0xff]  ;;  %v284_v45 = vld [vmem:[#allocation5 + $0x7a0] sm:$0xff]  ;;  %v242_v24 = vld [vmem:[#allocation5 + $0x650] sm:$0xff] }
  0x6e   :  { %792 = vmatprep.mubr.f32.mxu1 %v345_v63  ;;  %v213_v63 = vld [vmem:[#allocation5 + $0x568] sm:$0xff]  ;;  %v1390_v4 = vpack.c.bf16 %v181_v60, %v180_v59  ;;  %v353_v44 = vrot.slane %v1656_v48, %v320_v53  ;;  %v236_v51 = vld [vmem:[#allocation5 + $0x620] sm:$0xff]  ;;  %v286_v59 = vld [vmem:[#allocation5 + $0x7b0] sm:$0xff] }
  0x6f   :  { %1371 = vmatpush3.bf16.msra.mxu0 %v1370_v0  ;;  %v198_v0 = vld [vmem:[#allocation5 + $0x4f0] sm:$0xff]  ;;  %v1422_v5 = vpack.c.bf16 %v213_v63, %v212_v20  ;;  %v285_v46 = vld [vmem:[#allocation5 + $0x7a8] sm:$0xff]  ;;  %v287_v60 = vld [vmem:[#allocation5 + $0x7b8] sm:$0xff] }
  0x70   :  { %1403 = vmatpush3.bf16.msra.mxu1 %v1402_v1  ;;  %1373 = vmatprep.subr.bf16.mxu0 %v1372_v2  ;;  %v199_v1 = vld [vmem:[#allocation5 + $0x4f8] sm:$0xff]  ;;  %v230_v2 = vld [vmem:[#allocation5 + $0x5f0] sm:$0xff]  ;;  %v269_v53 = vld [vmem:[#allocation5 + $0x728] sm:$0xff] }
  0x71   :  { %1405 = vmatprep.subr.bf16.mxu1 %v1404_v6  ;;  %v1392_v6 = vpack.c.bf16 %v199_v1, %v198_v0  ;;  %v1424_v9 = vpack.c.bf16 %v231_v3, %v230_v2  ;;  %v1470_v20 = vpack.c.bf16 %v269_v53, %v268_v54  ;;  %v238_v63 = vld [vmem:[#allocation5 + $0x630] sm:$0xff]  ;;  %v239_v0 = vld [vmem:[#allocation5 + $0x638] sm:$0xff]  ;;  %v1472_v2 = vpack.c.bf16 %v287_v60, %v286_v59 }
  0x72   :  { %v270_v1 = vld [vmem:[#allocation5 + $0x730] sm:$0xff]  ;;  %v271_v3 = vld [vmem:[#allocation5 + $0x738] sm:$0xff]  ;;  %v1442_v7 = vpack.c.bf16 %v239_v0, %v238_v63  ;;  %v349_v59 = vrot.slane %v1656_v48, %v316_v27  ;;  %v357_v60 = vrot.slane %v1656_v48, %v324_v31 }
  0x73   :  { %1375 = vmatpush3.bf16.msra.mxu0 %v1374_v11  ;;  %v248_v11 = vld [vmem:[#allocation5 + $0x680] sm:$0xff]  ;;  %v1474_v8 = vpack.c.bf16 %v271_v3, %v270_v1  ;;  %v279_v53 = vld [vmem:[#allocation5 + $0x778] sm:$0xff] }
  0x74   :  { %1407 = vmatpush3.bf16.msra.mxu1 %v1406_v13  ;;  %1377 = vmatprep.subr.bf16.mxu0 %v1376_v14  ;;  %v249_v13 = vld [vmem:[#allocation5 + $0x688] sm:$0xff]  ;;  %v280_v14 = vld [vmem:[#allocation5 + $0x780] sm:$0xff] }
  0x75   :  { %1409 = vmatprep.subr.bf16.mxu1 %v1408_v18  ;;  %v1428_v18 = vpack.c.bf16 %v249_v13, %v248_v11  ;;  %v1460_v23 = vpack.c.bf16 %v281_v15, %v280_v14  ;;  %v241_v11 = vld [vmem:[#allocation5 + $0x648] sm:$0xff]  ;;  %v272_v13 = vld [vmem:[#allocation5 + $0x740] sm:$0xff] }
  0x76   :  { %v273_v15 = vld [vmem:[#allocation5 + $0x748] sm:$0xff]  ;;  %v1446_v21 = vpack.c.bf16 %v241_v11, %v240_v12 }
  0x77   :  { %1379 = vmatpush3.bf16.msra.mxu0 %v1378_v25  ;;  %v250_v25 = vld [vmem:[#allocation5 + $0x690] sm:$0xff]  ;;  %v1478_v22 = vpack.c.bf16 %v273_v15, %v272_v13 }
  0x78   :  { %1411 = vmatpush3.bf16.msra.mxu1 %v1410_v26  ;;  %1381 = vmatprep.subr.bf16.mxu0 %v1380_v28  ;;  %v251_v26 = vld [vmem:[#allocation5 + $0x698] sm:$0xff]  ;;  %v333_v28 = vrot.slane %v1656_v48, %v300_v39  ;;  %v253_v39 = vld [vmem:[#allocation5 + $0x6a8] sm:$0xff] }
  0x79   :  { %1413 = vmatprep.subr.bf16.mxu1 %v1412_v33  ;;  %v341_v33 = vrot.slane %v1656_v48, %v308_v43  ;;  %v1432_v35 = vpack.c.bf16 %v251_v26, %v250_v25  ;;  %v361_v43 = vrot.slane %v1656_v48, %v328_v57  ;;  %v1438_v57 = vpack.c.bf16 %v237_v52, %v236_v51  ;;  %v243_v25 = vld [vmem:[#allocation5 + $0x658] sm:$0xff]  ;;  %v274_v26 = vld [vmem:[#allocation5 + $0x750] sm:$0xff] }
  0x7a   :  { %v246_v51 = vld [vmem:[#allocation5 + $0x670] sm:$0xff]  ;;  %v247_v52 = vld [vmem:[#allocation5 + $0x678] sm:$0xff] }
  0x7b   :  { %1383 = vmatpush3.bf16.msra.mxu0 %v1382_v40  ;;  %v1464_v40 = vpack.c.bf16 %v283_v30, %v282_v29  ;;  %v275_v29 = vld [vmem:[#allocation5 + $0x758] sm:$0xff]  ;;  %v260_v30 = vld [vmem:[#allocation5 + $0x6e0] sm:$0xff] }
  0x7c   :  { %1415 = vmatpush3.bf16.msra.mxu1 %v1414_v41  ;;  %1385 = vmatprep.subr.bf16.mxu0 %v1384_v42  ;;  %v267_v41 = vld [vmem:[#allocation5 + $0x718] sm:$0xff]  ;;  %v252_v42 = vld [vmem:[#allocation5 + $0x6a0] sm:$0xff] }
  0x7d   :  { %1417 = vmatprep.subr.bf16.mxu1 %v1416_v47  ;;  %v1434_v47 = vpack.c.bf16 %v235_v37, %v234_v36  ;;  %v1466_v49 = vpack.c.bf16 %v267_v41, %v266_v38  ;;  %v1436_v50 = vpack.c.bf16 %v253_v39, %v252_v42  ;;  %v1482_v36 = vpack.c.bf16 %v275_v29, %v274_v26  ;;  %v244_v38 = vld [vmem:[#allocation5 + $0x660] sm:$0xff]  ;;  %v277_v39 = vld [vmem:[#allocation5 + $0x768] sm:$0xff] }
  0x7e   :  { %v276_v41 = vld [vmem:[#allocation5 + $0x760] sm:$0xff] }
  0x7f   :  { %1387 = vmatpush3.bf16.msra.mxu0 %v1386_v55  ;;  %v1468_v55 = vpack.c.bf16 %v285_v46, %v284_v45  ;;  %v263_v45 = vld [vmem:[#allocation5 + $0x6f8] sm:$0xff]  ;;  %v294_v46 = vld [vmem:[#allocation5 + $0x7f0] sm:$0xff] }
  0x80   :  { %1419 = vmatpush3.bf16.msra.mxu1 %v1418_v56  ;;  %1389 = vmatprep.subr.bf16.mxu0 %v1388_v58  ;;  %v254_v56 = vld [vmem:[#allocation5 + $0x6b0] sm:$0xff]  ;;  %v255_v58 = vld [vmem:[#allocation5 + $0x6b8] sm:$0xff] }
  0x81   :  { %1421 = vmatprep.subr.bf16.mxu1 %v1420_v62  ;;  %v1440_v62 = vpack.c.bf16 %v255_v58, %v254_v56  ;;  %v1458_v56 = vpack.c.bf16 %v247_v52, %v246_v51 }
  0x83   :  { %1391 = vmatpush3.bf16.msra.mxu0 %v1390_v4  ;;  %v256_v4 = vld [vmem:[#allocation5 + $0x6c0] sm:$0xff] }
  0x84   :  { %1423 = vmatpush3.bf16.msra.mxu1 %v1422_v5  ;;  %1393 = vmatprep.subr.bf16.mxu0 %v1392_v6  ;;  %v257_v5 = vld [vmem:[#allocation5 + $0x6c8] sm:$0xff]  ;;  %v288_v6 = vld [vmem:[#allocation5 + $0x7c0] sm:$0xff] }
  0x85   :  { %1425 = vmatprep.subr.bf16.mxu1 %v1424_v9  ;;  %v1444_v9 = vpack.c.bf16 %v257_v5, %v256_v4  ;;  %v1476_v14 = vpack.c.bf16 %v289_v10, %v288_v6 }
  0x87   :  { %1395 = vmatpush3.bf16.msra.mxu0 %v1394_v16  ;;  %v258_v16 = vld [vmem:[#allocation5 + $0x6d0] sm:$0xff] }
  0x88   :  { %1427 = vmatpush3.bf16.msra.mxu1 %v1426_v17  ;;  %1429 = vmatprep.subr.bf16.mxu0 %v1428_v18  ;;  %v259_v17 = vld [vmem:[#allocation5 + $0x6d8] sm:$0xff]  ;;  %v290_v18 = vld [vmem:[#allocation5 + $0x7d0] sm:$0xff] }
  0x89   :  { %1461 = vmatprep.subr.bf16.mxu1 %v1460_v23  ;;  %v1448_v23 = vpack.c.bf16 %v259_v17, %v258_v16 }
  0x8a   :  { %723 = vmatmul.mubr.f32.vlgmr.msra.gmra.mrb[4].mxu0 %v333_v28  ;;  %v1480_v28 = vpack.c.bf16 %v291_v19, %v290_v18 }
  0x8b   :  { %1431 = vmatpush3.bf16.msra.mxu0 %v1430_v32  ;;  %793 = vmatmul.mubr.f32.vlgmr.msra.gmra.mrb[4].mxu1 %v341_v33  ;;  %v261_v32 = vld [vmem:[#allocation5 + $0x6e8] sm:$0xff]  ;;  %v292_v33 = vld [vmem:[#allocation5 + $0x7e0] sm:$0xff] }
  0x8c   :  { %1463 = vmatpush3.bf16.msra.mxu1 %v1462_v34  ;;  %1433 = vmatprep.subr.bf16.mxu0 %v1432_v35  ;;  %v293_v34 = vld [vmem:[#allocation5 + $0x7e8] sm:$0xff]  ;;  %v1450_v35 = vpack.c.bf16 %v243_v25, %v242_v24  ;;  %v1452_v37 = vpack.c.bf16 %v261_v32, %v260_v30 }
  0x8d   :  { %1465 = vmatprep.subr.bf16.mxu1 %v1464_v40  ;;  %862 = vmatprep.mubr.f32.mxu0 %v353_v44  ;;  %v245_v40 = vld [vmem:[#allocation5 + $0x668] sm:$0xff]  ;;  %v1484_v42 = vpack.c.bf16 %v293_v34, %v292_v33  ;;  %v262_v44 = vld [vmem:[#allocation5 + $0x6f0] sm:$0xff] }
  0x8e   :  { %932 = vmatprep.mubr.f32.mxu1 %v361_v43  ;;  %v295_v43 = vld [vmem:[#allocation5 + $0x7f8] sm:$0xff] }
  0x8f   :  { %1435 = vmatpush3.bf16.msra.mxu0 %v1434_v47  ;;  %v1454_v47 = vpack.c.bf16 %v245_v40, %v244_v38  ;;  %v1488_v54 = vpack.c.bf16 %v295_v43, %v294_v46 }
  0x90   :  { %1467 = vmatpush3.bf16.msra.mxu1 %v1466_v49  ;;  %1437 = vmatprep.subr.bf16.mxu0 %v1436_v50  ;;  %v1486_v49 = vpack.c.bf16 %v277_v39, %v276_v41  ;;  %v1456_v50 = vpack.c.bf16 %v263_v45, %v262_v44 }
  0x91   :  { %1469 = vmatprep.subr.bf16.mxu1 %v1468_v55  ;;  %v278_v55 = vld [vmem:[#allocation5 + $0x770] sm:$0xff] }
  0x92   :  { %v1490_v58 = vpack.c.bf16 %v279_v53, %v278_v55 }
  0x93   :  { %1439 = vmatpush3.bf16.msra.mxu0 %v1438_v57 }
  0x94   :  { %1471 = vmatpush3.bf16.msra.mxu1 %v1470_v20  ;;  %1441 = vmatprep.subr.bf16.mxu0 %v1440_v62 }
  0x95   :  { %1473 = vmatprep.subr.bf16.mxu1 %v1472_v2 }
  0x97   :  { %1443 = vmatpush3.bf16.msra.mxu0 %v1442_v7 }
  0x98   :  { %1475 = vmatpush3.bf16.msra.mxu1 %v1474_v8  ;;  %1445 = vmatprep.subr.bf16.mxu0 %v1444_v9 }
  0x99   :  { %1477 = vmatprep.subr.bf16.mxu1 %v1476_v14 }
  0x9b   :  { %1447 = vmatpush3.bf16.msra.mxu0 %v1446_v21 }
  0x9c   :  { %1479 = vmatpush3.bf16.msra.mxu1 %v1478_v22  ;;  %1449 = vmatprep.subr.bf16.mxu0 %v1448_v23 }
  0x9d   :  { %1481 = vmatprep.subr.bf16.mxu1 %v1480_v28 }
  0x9f   :  { %1451 = vmatpush3.bf16.msra.mxu0 %v1450_v35 }
  0xa0   :  { %1483 = vmatpush3.bf16.msra.mxu1 %v1482_v36  ;;  %1453 = vmatprep.subr.bf16.mxu0 %v1452_v37 }
  0xa1   :  { %1485 = vmatprep.subr.bf16.mxu1 %v1484_v42 }
  0xa3   :  { %1455 = vmatpush3.bf16.msra.mxu0 %v1454_v47 }
  0xa4   :  { %1487 = vmatpush3.bf16.msra.mxu1 %v1486_v49  ;;  %1457 = vmatprep.subr.bf16.mxu0 %v1456_v50 }
  0xa5   :  { %1489 = vmatprep.subr.bf16.mxu1 %v1488_v54 }
  0xa7   :  { %1459 = vmatpush3.bf16.msra.mxu0 %v1458_v56 }
  0xa8   :  { %1491 = vmatpush3.bf16.msra.mxu1 %v1490_v58 }
  0xaa   :  { %863 = vmatmul.mubr.f32.vlgmr.msra.gmra.mrb[6].mxu0 %v349_v59 }
  0xab   :  { %933 = vmatmul.mubr.f32.vlgmr.msra.gmra.mrb[6].mxu1 %v357_v60 }
 0x11d   :  { %v988_v57 = vpop.f32.mrb[0].mxu0 }
 0x11e   :  { %v1023_v20 = vpop.f32.mrb[0].mxu1  ;;  %v989_v62 = vpop.f32.mrb[1].mxu0 }
 0x11f   :  { %v990_v63 = vadd.f32 %v989_v62, %v988_v57  ;;  %v1024_v0 = vpop.f32.mrb[1].mxu1 }
 0x120   :  { %v1025_v1 = vadd.f32 %v1024_v0, %v1023_v20 }
 0x122   :  { %v515_v2 = vadd.f32 %v1025_v1, %v990_v63 }
 0x13d   :  { %v1058_v3 = vpop.f32.mrb[2].mxu0 }
 0x13e   :  { %v1059_v4 = vpop.f32.mrb[3].mxu0  ;;  %v1093_v5 = vpop.f32.mrb[2].mxu1 }
 0x13f   :  { %v1060_v6 = vadd.f32 %v1059_v4, %v1058_v3  ;;  %v1094_v27 = vpop.f32.mrb[3].mxu1 }
 0x140   :  { %v1095_v10 = vadd.f32 %v1094_v27, %v1093_v5 }
 0x141   :  { %v585_v7 = vadd.f32 %v1060_v6, %v515_v2 }
 0x143   :  { %v655_v61 = vadd.f32 %v1095_v10, %v585_v7 }
 0x15d   :  { %v1128_v8 = vpop.f32.mrb[4].mxu0 }
 0x15e   :  { %v1129_v31 = vpop.f32.mrb[5].mxu0  ;;  %v1163_v48 = vpop.f32.mrb[4].mxu1 }
 0x15f   :  { %v1130_v9 = vadd.f32 %v1129_v31, %v1128_v8  ;;  %v1164_v12 = vpop.f32.mrb[5].mxu1 }
 0x160   :  { %v1165_v11 = vadd.f32 %v1164_v12, %v1163_v48 }
 0x161   :  { %v725_v13 = vadd.f32 %v1130_v9, %v655_v61 }
 0x163   :  { %v795_v14 = vadd.f32 %v1165_v11, %v725_v13 }
 0x17d   :  { %v1198_v15 = vpop.f32.mrb[6].mxu0 }
 0x17e   :  { %v1199_v16 = vpop.f32.mrb[7].mxu0  ;;  %v1233_v17 = vpop.f32.mrb[6].mxu1 }
 0x17f   :  { %v1200_v18 = vadd.f32 %v1199_v16, %v1198_v15  ;;  %v1234_v19 = vpop.f32.mrb[7].mxu1 }
 0x180   :  { %v1235_v21 = vadd.f32 %v1234_v19, %v1233_v17 }
 0x181   :  { %v865_v22 = vadd.f32 %v1200_v18, %v795_v14 }
 0x183   :  { %v935_v23 = vadd.f32 %v1235_v21, %v865_v22 }
 0x185   :  { %v938_v24 = vmul.f32 0.0625, %v935_v23 }
 0x187   :  { %939 = vst [vmem:[#allocation7] sm:$0x1] %v938_v24 }
 0x188   :  { %1552 = shalt.err (!%p1549_p6)
}
 0x189   :  { %s1553_s11 = scalar_lea.hbm %s1696_s2, 16 }
 0x18a   :  { %p1554_p7 = scmp.ne.s32.totalorder %s1696_s2, %s1553_s11  ;;  %p1557_p8 = scmp.lt.u32.totalorder %s1553_s11, %s1696_s2 }
 0x18c   :  { %p1559_p9 = pnand %p1557_p8, %p1554_p7 }
 0x18e   :  { %1562 = shalt.err (!%p1559_p9)
}
 0x18f   :  { %949 = dma.vmem_to_hbm [thread:$0]  %s947_s6, 16, %s1696_s2, [#allocation4]  }
 0x190   :  { %1567 = dma.done.wait [#allocation4], 16  }
 0x191   :  { %1568 = vsyncadd [#allocation4], 4294967280 }
 0x192   :  { %953 = vsyncpa [#allocation3], 1 }
 0x193   :  { %954 = vsyncpa [#allocation6], 1 }
 0x194   :  { %955 = vsyncpa [#allocation4], 1 }

</bundles_post_ra>
